<compile_context>
chip_gen: v5e
topology: v5e:2x2
jax: 0.10.0
libtpu: 0.0.40
codegen_flags: <defaults>
</compile_context>

<pallas_src>
import math

import jax
import jax.numpy as jnp
from jax.experimental import pallas as pl
from jax.experimental.pallas import tpu as pltpu


# ----------------------------- kernels ------------------------------------ #

def _lateral_kernel(x_ref, w_ref, b_ref, td_ref, o_ref, acc_ref):
    """One (Cout, tm) output tile: out = w @ x + b + top_down, K-blocked over Cin."""
    k = pl.program_id(2)

    @pl.when(k == 0)
    def _():
        acc_ref[...] = jnp.zeros_like(acc_ref)

    acc_ref[...] += jnp.dot(w_ref[...], x_ref[...],
                            preferred_element_type=jnp.float32)

    @pl.when(k == pl.num_programs(2) - 1)
    def _():
        res = acc_ref[...] + b_ref[...] + td_ref[...].astype(jnp.float32)
        o_ref[...] = res.astype(o_ref.dtype)


def _top_kernel(x_ref, w_ref, b_ref, o_ref, acc_ref):
    """Same as _lateral_kernel but without the top-down add (top pyramid level)."""
    k = pl.program_id(2)

    @pl.when(k == 0)
    def _():
        acc_ref[...] = jnp.zeros_like(acc_ref)

    acc_ref[...] += jnp.dot(w_ref[...], x_ref[...],
                            preferred_element_type=jnp.float32)

    @pl.when(k == pl.num_programs(2) - 1)
    def _():
        o_ref[...] = (acc_ref[...] + b_ref[...]).astype(o_ref.dtype)


# ------------------------- tile / VMEM policy ------------------------------ #

def _vmem_limits():
    """(vmem_limit_bytes, tile_budget_bytes), derived from this chip's VMEM."""
    try:
        phys = int(pltpu.get_tpu_info().vmem_capacity_bytes)
    except Exception:
        phys = 64 * 1024 * 1024  # conservative default: v7x per-TensorCore VMEM
    limit = min(phys * 3 // 4, 96 * 1024 * 1024)   # explicit limit with headroom
    budget = int(limit * 0.6)                      # what tiles+double-buffers may use
    return limit, budget


def _divisible_tile(total, cap, align):
    """Largest multiple of `align` that divides `total` and is <= cap, else `total`."""
    t = min(cap, total)
    t = (t // align) * align
    while t >= align and total % t != 0:
        t -= align
    return t if t >= align else total


def _choose_tiles(n, cin, m, cout, itemsize, budget, has_td):
    # Reduction tile over Cin: only split when Cin is large and 128-aligned so
    # both the (tk, tm) x-block and the (Cout, tk) w-block stay layout-legal.
    if cin % 128 == 0 and cin > 512:
        tk = _divisible_tile(cin, 512, 128)
    else:
        tk = cin

    # VMEM bytes consumed per lane of tm: double-buffered x / td / out + f32 acc.
    per_lane = 2 * tk * itemsize + 2 * cout * itemsize + cout * 4
    if has_td:
        per_lane += 2 * cout * itemsize
    fixed = 2 * cout * tk * itemsize + cout * 4          # weights + bias
    cap = min(2048, max(128, (budget - fixed) // max(per_lane, 1)))
    if n == 1:               # keep >=2 M blocks so both v7x TensorCores get work
        cap = min(cap, max(128, m // 2))
    tm = _divisible_tile(m, cap, 128)
    return tk, tm


# ------------------------------ wrappers ----------------------------------- #

def conv1x1_bias_td(x, w, b, td=None):
    """Pointwise (1x1) conv + bias (+ optional fused top-down add).

    x : (N, Cin, M)   flattened NCHW input, M = H*W
    w : (Cout, Cin)
    b : (Cout, 1)     float32
    td: (N, Cout, M)  or None
    returns (N, Cout, M) in x.dtype  (lane-dense output: last dim = M)
    """
    n, cin, m = x.shape
    cout = w.shape[0]
    itemsize = jnp.dtype(x.dtype).itemsize
    vmem_limit, budget = _vmem_limits()
    tk, tm = _choose_tiles(n, cin, m, cout, itemsize, budget, td is not None)

    grid = (n, m // tm, cin // tk)   # reduction axis last

    x_spec = pl.BlockSpec((None, tk, tm), lambda nb, i, k: (nb, k, i))
    w_spec = pl.BlockSpec((cout, tk), lambda nb, i, k: (0, k))
    b_spec = pl.BlockSpec((cout, 1), lambda nb, i, k: (0, 0))
    o_spec = pl.BlockSpec((None, cout, tm), lambda nb, i, k: (nb, 0, i))

    if td is None:
        kernel = _top_kernel
        in_specs = [x_spec, w_spec, b_spec]
        args = (x, w, b)
    else:
        kernel = _lateral_kernel
        td_spec = pl.BlockSpec((None, cout, tm), lambda nb, i, k: (nb, 0, i))
        in_specs = [x_spec, w_spec, b_spec, td_spec]
        args = (x, w, b, td)

    return pl.pallas_call(
        kernel,
        out_shape=jax.ShapeDtypeStruct((n, cout, m), x.dtype),
        grid_spec=pltpu.PrefetchScalarGridSpec(
            num_scalar_prefetch=0,
            grid=grid,
            in_specs=in_specs,
            out_specs=o_spec,
            scratch_shapes=[pltpu.VMEM((cout, tm), jnp.float32)],
        ),
        compiler_params=pltpu.CompilerParams(
            dimension_semantics=("parallel", "parallel", "arbitrary"),
            vmem_limit_bytes=int(vmem_limit),
        ),
    )(*args)


def nearest_resize_nchw(x, out_hw):
    """F.interpolate(x, size=out_hw, mode='nearest') for NCHW tensors."""
    _, _, h_in, w_in = x.shape
    h_out, w_out = out_hw
    row_idx = (jnp.arange(h_out) * h_in // h_out).astype(jnp.int32)
    col_idx = (jnp.arange(w_out) * w_in // w_out).astype(jnp.int32)
    return jnp.take(jnp.take(x, row_idx, axis=2), col_idx, axis=3)


def init_fpn_params(key, in_channels_list, out_channels):
    """kaiming_uniform_(a=1) weights (Cout, Cin), zero bias — as in __init__."""
    params = []
    for cin in in_channels_list:
        if cin == 0:
            raise ValueError("in_channels=0 is currently not supported")
        key, wk = jax.random.split(key)
        bound = math.sqrt(2.0 / (1.0 + 1.0 ** 2)) * math.sqrt(3.0 / cin)  # a = 1
        w = jax.random.uniform(wk, (out_channels, cin), jnp.float32, -bound, bound)
        b = jnp.zeros((out_channels, 1), jnp.float32)
        params.append((w, b))
    return params


def fpn_forward(feats, params, compute_dtype=None):
    """feats: list of NCHW feature maps, highest resolution first.
    Returns last_inner (NCHW at the highest resolution), matching the module.
    compute_dtype=jnp.bfloat16 halves HBM traffic (f32 MXU accumulation kept)."""
    def prep(a):
        return a.astype(compute_dtype) if compute_dtype is not None else a

    # Top pyramid level: dedicated kernel, no zero top-down tensor streamed.
    x = feats[-1]
    n, cin, h, wd = x.shape
    w, b = params[-1]
    out = conv1x1_bias_td(prep(x).reshape(n, cin, h * wd), prep(w), b, td=None)
    last_inner = out.reshape(n, -1, h, wd)

    for idx in range(len(feats) - 2, -1, -1):
        x = feats[idx]
        n, cin, h, wd = x.shape
        w, b = params[idx]
        # TODO(synk): fuse this nearest-neighbor upsample into the lateral kernel
        # (coarse-block index_map + in-lane expansion) to avoid one HBM
        # write+read of the upsampled tensor per level; kept as plain-JAX gather.
        td = nearest_resize_nchw(last_inner, (h, wd)).reshape(n, -1, h * wd)
        out = conv1x1_bias_td(prep(x).reshape(n, cin, h * wd), prep(w), b, td)
        last_inner = out.reshape(n, -1, h, wd)
    return last_inner


def fpn_forward_ref(feats, params):
    """Pure-JAX reference for correctness checking."""
    def conv1x1(x, w, b):
        y = jnp.einsum("nchw,oc->nohw", x, w)
        return y + b.reshape(1, -1, 1, 1)

    last_inner = conv1x1(feats[-1], *params[-1])
    for idx in range(len(feats) - 2, -1, -1):
        lateral = conv1x1(feats[idx], *params[idx])
        td = nearest_resize_nchw(last_inner, feats[idx].shape[-2:])
        last_inner = lateral + td
    return last_inner


if __name__ == "__main__":
    key = jax.random.PRNGKey(0)
    k_feat0, k_feat1, k_feat2, k_params = jax.random.split(key, 4)

    # Small FPN: three levels, highest resolution first (like OrderedDict values).
    in_channels_list = [4, 8, 16]
    out_channels = 8
    feats = [
        jax.random.normal(k_feat0, (2, 4, 16, 16), jnp.float32),
        jax.random.normal(k_feat1, (2, 8, 8, 8), jnp.float32),
        jax.random.normal(k_feat2, (2, 16, 4, 4), jnp.float32),
    ]
    params = init_fpn_params(k_params, in_channels_list, out_channels)

    # f32 path — strict check against the pure-JAX reference.
    out = jax.block_until_ready(fpn_forward(feats, params))
    ref = fpn_forward_ref(feats, params)
    assert out.shape == (2, out_channels, 16, 16), out.shape
    assert jnp.allclose(out, ref, atol=1e-5, rtol=1e-5), "f32 mismatch vs reference"

    # bf16 compute path (halved HBM traffic, f32 accumulation) — loose check.
    out_bf16 = jax.block_until_ready(
        fpn_forward(feats, params, compute_dtype=jnp.bfloat16))
    assert out_bf16.shape == out.shape
    assert jnp.allclose(out_bf16.astype(jnp.float32), ref, atol=0.2, rtol=0.05), \
        "bf16 mismatch vs reference"

    print("KERNEL_OK")
</pallas_src>

<mosaic_0001>
module attributes {stable_mosaic.version = 11 : i64} {
  func.func @_top_kernel(%arg0: i32, %arg1: i32, %arg2: i32, %arg3: memref<1x16x16xf32, #tpu.memory_space<vmem>>, %arg4: memref<8x16xf32, #tpu.memory_space<vmem>>, %arg5: memref<8x1xf32, #tpu.memory_space<vmem>>, %arg6: memref<1x8x16xf32, #tpu.memory_space<vmem>>, %arg7: memref<8x16xf32, #tpu.memory_space<vmem>>) attributes {dimension_semantics = [#tpu.dimension_semantics<parallel>, #tpu.dimension_semantics<parallel>, #tpu.dimension_semantics<arbitrary>], iteration_bounds = array<i64: 2, 1, 1>, scalar_prefetch = 0 : i64, scratch_operands = 1 : i64, tpu.core_type = #tpu.core_type<tc>, window_params = [{transform_indices = @transform_0, window_bounds = array<i64: 1, 16, 16>}, {transform_indices = @transform_1, window_bounds = array<i64: 8, 16>}, {pipeline_mode = #tpu.pipeline_mode<synchronous>, transform_indices = @transform_2, window_bounds = array<i64: 8, 1>}, {transform_indices = @transform_3, window_bounds = array<i64: 1, 8, 16>}]} {
    %c0_i32 = arith.constant 0 : i32
    %0 = arith.cmpi eq, %arg2, %c0_i32 : i32
    %1 = arith.extui %0 : i1 to i32
    %c0_i32_0 = arith.constant 0 : i32
    %2 = arith.cmpi ne, %1, %c0_i32_0 : i32
    scf.if %2 {
      %cst_11 = arith.constant 0.000000e+00 : f32
      %13 = vector.broadcast %cst_11 : f32 to vector<8x16xf32>
      %c0_12 = arith.constant 0 : index
      %c0_13 = arith.constant 0 : index
      %14 = vector.load %arg7[%c0_12, %c0_13] : memref<8x16xf32, #tpu.memory_space<vmem>>, vector<8x16xf32>
      tpu.vector_store %arg7[%c0_12, %c0_13], %13 {strides = array<i32>} : memref<8x16xf32, #tpu.memory_space<vmem>>, vector<8x16xf32>,
    } else {
    }
    %c0 = arith.constant 0 : index
    %c0_1 = arith.constant 0 : index
    %3 = vector.load %arg7[%c0, %c0_1] : memref<8x16xf32, #tpu.memory_space<vmem>>, vector<8x16xf32>
    %c0_2 = arith.constant 0 : index
    %c0_3 = arith.constant 0 : index
    %4 = vector.load %arg4[%c0_2, %c0_3] : memref<8x16xf32, #tpu.memory_space<vmem>>, vector<8x16xf32>
    %c0_4 = arith.constant 0 : index
    %c0_5 = arith.constant 0 : index
    %c0_6 = arith.constant 0 : index
    %5 = vector.load %arg3[%c0_4, %c0_5, %c0_6] : memref<1x16x16xf32, #tpu.memory_space<vmem>>, vector<1x16x16xf32>
    %6 = vector.shape_cast %5 : vector<1x16x16xf32> to vector<16x16xf32>
    %cst = arith.constant dense<0.000000e+00> : vector<8x16xf32>
    %7 = tpu.matmul %4, %6, %cst {dimension_numbers = #tpu.dot_dimension_numbers<[1], [0], [0], [1], [0, 0, 1, 1], [], []>} : vector<8x16xf32>, vector<16x16xf32>, vector<8x16xf32> -> vector<8x16xf32>
    %8 = arith.addf %3, %7 : vector<8x16xf32>
    %c0_7 = arith.constant 0 : index
    %c0_8 = arith.constant 0 : index
    %9 = vector.load %arg7[%c0_7, %c0_8] : memref<8x16xf32, #tpu.memory_space<vmem>>, vector<8x16xf32>
    tpu.vector_store %arg7[%c0_7, %c0_8], %8 {strides = array<i32>} : memref<8x16xf32, #tpu.memory_space<vmem>>, vector<8x16xf32>,
    %c0_i32_9 = arith.constant 0 : i32
    %10 = arith.cmpi eq, %arg2, %c0_i32_9 : i32
    %11 = arith.extui %10 : i1 to i32
    %c0_i32_10 = arith.constant 0 : i32
    %12 = arith.cmpi ne, %11, %c0_i32_10 : i32
    scf.if %12 {
      %c0_11 = arith.constant 0 : index
      %c0_12 = arith.constant 0 : index
      %13 = vector.load %arg7[%c0_11, %c0_12] : memref<8x16xf32, #tpu.memory_space<vmem>>, vector<8x16xf32>
      %c0_13 = arith.constant 0 : index
      %c0_14 = arith.constant 0 : index
      %14 = vector.load %arg5[%c0_13, %c0_14] : memref<8x1xf32, #tpu.memory_space<vmem>>, vector<8x1xf32>
      %15 = vector.broadcast %14 : vector<8x1xf32> to vector<8x16xf32>
      %16 = arith.addf %13, %15 : vector<8x16xf32>
      %c0_15 = arith.constant 0 : index
      %c0_16 = arith.constant 0 : index
      %c0_17 = arith.constant 0 : index
      %17 = vector.load %arg6[%c0_15, %c0_16, %c0_17] : memref<1x8x16xf32, #tpu.memory_space<vmem>>, vector<1x8x16xf32>
      %18 = vector.shape_cast %17 : vector<1x8x16xf32> to vector<8x16xf32>
      %19 = vector.shape_cast %16 : vector<8x16xf32> to vector<1x8x16xf32>
      tpu.vector_store %arg6[%c0_15, %c0_16, %c0_17], %19 {strides = array<i32>} : memref<1x8x16xf32, #tpu.memory_space<vmem>>, vector<1x8x16xf32>,
    } else {
    }
    return
  }
  func.func @transform_0(%arg0: i32, %arg1: i32, %arg2: i32) -> (i32, i32, i32) {
    %c0_i32 = arith.constant 0 : i32
    return %arg0, %arg2, %arg1 : i32, i32, i32
  }
  func.func @transform_1(%arg0: i32, %arg1: i32, %arg2: i32) -> (i32, i32) {
    %c0_i32 = arith.constant 0 : i32
    %c0_i32_0 = arith.constant 0 : i32
    return %c0_i32, %arg2 : i32, i32
  }
  func.func @transform_2(%arg0: i32, %arg1: i32, %arg2: i32) -> (i32, i32) {
    %c0_i32 = arith.constant 0 : i32
    %c0_i32_0 = arith.constant 0 : i32
    %c0_i32_1 = arith.constant 0 : i32
    return %c0_i32, %c0_i32_0 : i32, i32
  }
  func.func @transform_3(%arg0: i32, %arg1: i32, %arg2: i32) -> (i32, i32, i32) {
    %c0_i32 = arith.constant 0 : i32
    %c0_i32_0 = arith.constant 0 : i32
    return %arg0, %c0_i32, %arg1 : i32, i32, i32
  }
}

</mosaic_0001>

<bundles_post_ra>
// kernel: tpu_custom_call.1
= control target key start
LH: loop header
LB: loop body
LE: loop exit
PB: predicated region body
PF: predicated region fallthrough
CT: control target
= control target key end

     0   :  { %8 = vsyncpa [#allocation4], 0  ;;  %s756_s0 = inlined_call_operand.hbm [shape: f32[2,16,16], index: 0, kind: input, shape index: {}]   ;;  %s757_s1 = inlined_call_operand.vmem [shape: f32[8,16], index: 1, kind: input, shape index: {}]   ;;  %s758_s2 = inlined_call_operand.vmem [shape: f32[8,1], index: 2, kind: input, shape index: {}]   ;;  %s759_s3 = inlined_call_operand.hbm [shape: f32[2,8,16], index: 3, kind: output, shape index: {}]  }
   0x1   :  { %10 = vsyncpa [#allocation4 + $0x1], 0 }
   0x2   :  { %11 = vsyncpa [#allocation5], 0 }
   0x3   :  { %13 = vsyncpa [#allocation5 + $0x1], 0  ;;  %s625_s12 = smov 0   ;;  %s627_s13 = smov 0  }
   0x4   :  { %s629_s14 = smov 0   ;;  %s631_s15 = smov 0  }
   0x5   :  { %s633_s16 = smov 0   ;;  %s635_s17 = smov 0  }
   0x6 LB: > { %s403_s18 = sadd.s32 4294967295, %s599_s17   ;;  %s404_s19 = sadd.s32 4294967294, %s599_s17   ;;  %s599_s17 = sphi %s635_s17, %s19_s17   ;;  %s595_s16 = sphi %s633_s16, %s768_s16   ;;  %s591_s15 = sphi %s631_s15, %s767_s15   ;;  %s587_s14 = sphi %s629_s14, %s766_s14   ;;  %s583_s13 = sphi %s627_s13, %s765_s13   ;;  %s579_s12 = sphi %s625_s12, %s764_s12  }
   0x7   : > { %s38_s20 = sadd.s32 1, %s595_s16  ;;  %s49_s21 = sadd.s32 1, %s587_s14 }
   0x8   : > { %p40_p0 = scmp.ge.s32.totalorder %s38_s20, 2  ;;  %p56_p1 = scmp.ne.s32.totalorder %s587_s14, %s583_s13 }
   0x9   : > { %p57_p2 = scmp.eq.s32.totalorder %s599_s17, 0  ;;  %p62_p3 = scmp.ne.s32.totalorder %s583_s13, %s579_s12 }
   0xa   : > { %s770_s20 = smov (%p40_p0, %s38_s20), 0  ;;  %p63_p5 = scmp.eq.s32.totalorder %s403_s18, 0 }
   0xb   : > { %p666_p4 = por %p57_p2, %p56_p1  ;;  %s42_s23 = ssub.s32 %s595_s16, %s770_s20 }
   0xc   : > { %p135_p6 = scmp.eq.s32.totalorder %s403_s18, 1  ;;  %p47_p7 = scmp.eq.s32.totalorder %s42_s23, 0 }
   0xd   : > { %p672_p8 = por %p63_p5, %p62_p3  ;;  %p141_p10 = scmp.eq.s32.totalorder %s404_s19, 1 }
   0xe   : > { %p676_p9 = por %p135_p6, %p56_p1  ;;  %p407_p12 = scmp.ge.s32.totalorder %s599_s17, 2 }
   0xf   : > { %s681_s26 = scalar_select %p47_p7, %s587_s14, %s49_s21  }
  0x10   : > { %p683_p11 = por %p141_p10, %p62_p3  ;;  %p432_p13 = scmp.lt.s32.totalorder %s599_s17, 2 }
  0x11   : > { %s171_s28 = sand.u32 1, %s587_s14   ;;  %s419_s30 = sshll.u32 %s595_s16, 4 }
  0x12   : > { %s408_s29 = sshll.u32 %s171_s28, 4  ;;  %s183_s6 = scalar_lea.hbm %s756_s0, %s419_s30 }
  0x13   : > { %s175_s7 = scalar_lea.vmem [#allocation3], %s408_s29  ;;  %s184_s9 = sshll.u32 %s183_s6, 4  ;;  %s185_s9 = int_to_ptr.hbm [resolvable:$true] %s184_s9 }
  0x14   : > { %s186_s8 = sshll.u32 %s175_s7, 4  ;;  %p425_p0 = pnand %p432_p13, %p666_p4  ;;  %s187_s8 = int_to_ptr.vmem [resolvable:$true] %s186_s8 }
  0x15   : > { %p411_p1 = scmp.ge.s32.totalorder %s599_s17, 1  ;;  %s172_s10 = scalar_lea.sflag [#allocation4], %s171_s28 }
  0x16   : > { %s601_s11 = smov 128   ;;  %s602_s18 = smov 8  }
  0x17   : > { %427 = dma.hbm_to_vmem [thread:$0]  (!%p425_p0), %s185_s9, 256, %s187_s8, %s172_s10, %s601_s11, %s601_s11, %s602_s18  }
  0x18   : > { %p194_p2 = scmp.lt.s32.totalorder %s599_s17, 3 }
  0x1a   : > { %p195_p3 = pnand %p411_p1, %p194_p2 }
  0x1b   : > { %s699_s19 = sand.u32 (!%p195_p3), 1, %s583_s13  }
  0x1c   : > { %198 = sbr.rel (%p195_p3) target bundleno = 179 (0xb3), region = 32  ;;  %s412_s21 = sshll.u32 (!%p195_p3), %s699_s19, 4 }
  0x1d   : > { %s201_s23 = scalar_lea.sflag (!%p195_p3), [#allocation4], %s699_s19  ;;  %s204_s29 = scalar_lea.vmem (!%p195_p3), [#allocation3], %s412_s21 }
  0x21   : > { %570 = dma.done.wait (%p672_p8), %s201_s23, 256  }
  0x22   : > { %572 = vsyncadd (%p672_p8), %s201_s23, 4294967040  ;;  %vm241_vm0 = vcmask 130048   ;;  %v603_v0 = vmov 0.0   ;;  %v604_v1 = vmov 0   ;;  %v246_v2 = vld [vmem:[%s204_s29 + $0x8] sm:$0xff]  ;;  %v245_v3 = vld [vmem:[%s204_s29] sm:$0xff] }
  0x23   : > { %242 = vst.msk [vmem:[#allocation2] sm:$0xff] %vm241_vm0, %v603_v0  ;;  %486 = vset.pattern.permute.xlu0 %v604_v1  ;;  %265 = vmatpush.msra.mxu0 %v246_v2  ;;  %v244_v4 = vld [vmem:[%s757_s1] sm:$0xff]  ;;  %s413_s24 = sshll.u32 %s699_s19, 3  ;;  %s416_s5 = sshll.u32 %s591_s15, 3 }
  0x24   : > { %v277_v5 = vld [vmem:[%s758_s2] sm:$0xff]  ;;  %s297_s8 = scalar_lea.hbm %s759_s3, %s416_s5  ;;  %s231_s9 = scalar_lea.vmem [#allocation6], %s413_s24 }
  0x25   : > { %280 = vperm.xlu0 %486, %v277_v5   ;;  %266 = vmatpush.msra.mxu0 %v245_v3  ;;  %s299_s10 = sshll.u32 %s231_s9, 4  ;;  %s301_s11 = sshll.u32 %s297_s8, 4  ;;  %s300_s10 = int_to_ptr.vmem [resolvable:$true] %s299_s10  ;;  %s302_s11 = int_to_ptr.hbm [resolvable:$true] %s301_s11 }
  0x26   : > { %414 = vmatmul.msk.f32.vlgmr.msra.gmra.mxu0 %vm241_vm0, %v244_v4  ;;  %s286_s18 = scalar_lea.sflag [#allocation5], %s699_s19  ;;  %s531_s21 = sshra.s32 %s302_s11, 4  ;;  %s532_s21 = int_to_ptr.hbm [resolvable:$true] %s531_s21 }
  0x27   : > { %s533_s15 = scalar_lea.hbm %s532_s21, 8  ;;  %s537_s22 = scalar_lea.hbm %s759_s3, 16 }
  0x28   : > { %p534_p4 = scmp.ne.s32.totalorder %s532_s21, %s533_s15  ;;  %p538_p7 = scmp.lt.s32.totalorder %s532_s21, %s759_s3 }
  0x29   : > { %p539_p8 = scmp.lt.s32.totalorder %s537_s22, %s533_s15 }
  0x2a   : > { %v243_v6 = vld [vmem:[#allocation2] sm:$0xff]  ;;  %p535_p5 = pnand %p534_p4, %p676_p9 }
  0x2b   : > { %p540_p10 = por %p539_p8, %p538_p7 }
  0x2c   : > { %p536_p6 = pneg %p535_p5 }
  0x2e   : > { %p541_p13 = pnand %p540_p10, %p536_p6 }
  0x97   : > { %v281_v9 = vpop.permute.xlu0 %280 }
  0xa3   : > { %v268_v7 = vpop.f32.mrf.mxu0 }
  0xa4   : > { %v271_v8 = vadd.f32 %v268_v7, %v243_v6 }
  0xa6   : > { %272 = vst.msk [vmem:[#allocation2] sm:$0xff] %vm241_vm0, %v271_v8 }
  0xad   : > { %v276_v10 = vld [vmem:[#allocation2] sm:$0xff] }
  0xae   : > { %v283_v11 = vadd.f32 %v281_v9, %v276_v10 }
  0xb0   : > { %284 = vst.msk [vmem:[%s231_s9] sm:$0xff] %vm241_vm0, %v283_v11 }
  0xb1   : > { %544 = shalt.err (!%p541_p13)
}
  0xb2   : > { %422 = dma.vmem_to_hbm [thread:$0]  (%p676_p9), %s300_s10, 128, %s302_s11, %s286_s18  }
  0xb3 PF: > { %s313_s19 = sand.u32 1, %s579_s12   ;;  %p429_p0 = pnand %p407_p12, %p683_p11 }
  0xb4   : > { %s314_s4 = scalar_lea.sflag [#allocation5], %s313_s19 }
  0xb5   : > { %p430_p1 = pneg %p429_p0 }
  0xb7   : > { %574 = dma.done.wait (%p430_p1), %s314_s4, 128  }
  0xb8   : > { %576 = vsyncadd (%p430_p1), %s314_s4, 4294967168  ;;  %s19_s17 = sadd.s32 1, %s599_s17   ;;  %s764_s12 = smov %s583_s13 }
  0xb9   : > { %p16_p2 = scmp.ge.s32.totalorder %s19_s17, 4   ;;  %s765_s13 = smov %s587_s14 }
  0xba   : > { %s766_s14 = smov %s681_s26  ;;  %s767_s15 = smov %s595_s16 }
  0xbb   : > { %s768_s16 = smov %s770_s20  ;;  %18 = sbr.rel (!%p16_p2) target bundleno = 6 (0x6), region = 88 }
  0xc0   :  { %320 = vsyncpa [#allocation4], 1 }
  0xc1   :  { %322 = vsyncpa [#allocation4 + $0x1], 1 }
  0xc2   :  { %323 = vsyncpa [#allocation5], 1 }
  0xc3   :  { %325 = vsyncpa [#allocation5 + $0x1], 1 }

</bundles_post_ra>
